<compile_context>
chip_gen: v7x
topology: tpu7x:2x2x1
jax: 0.10.0
libtpu: 0.0.40
codegen_flags: <defaults>
</compile_context>

<pallas_src>
import jax
import jax.numpy as jnp
from jax.experimental import pallas as pl
from jax.experimental.pallas import tpu as pltpu


def _round_up(x, m):
    return ((x + m - 1) // m) * m


def _maybe_buffered_spec(block_shape, index_map, buffer_count=None):
    """BlockSpec with optional explicit buffer count (falls back to default
    double-buffering if this jax version lacks the pipeline_mode kwarg)."""
    buffered = getattr(pl, "Buffered", None)
    if buffer_count is None or buffered is None:
        return pl.BlockSpec(block_shape, index_map)
    try:
        return pl.BlockSpec(block_shape, index_map,
                            pipeline_mode=buffered(buffer_count))
    except TypeError:
        return pl.BlockSpec(block_shape, index_map)


def _vit_head_kernel(x_ref, w_ref, b_ref, o_ref):
    # Hot path: bf16 MXU matmul with f32 accumulation; bias add + cast on the VPU.
    acc = jnp.dot(x_ref[...].astype(w_ref.dtype), w_ref[...],
                  preferred_element_type=jnp.float32)
    bias = b_ref[0:1, :].astype(jnp.float32)          # (1, tile_n), broadcast over rows
    o_ref[...] = (acc + bias).astype(o_ref.dtype)


def prepare_vit_head_params(w, b, *, compute_dtype=jnp.bfloat16):
    """One-time (parameter-load-time) prep: pad classes to a 128-lane multiple,
    cast W to the MXU compute dtype, broadcast bias to a full 8-sublane group.
    Doing this once keeps repeated HBM roundtrips out of the forward path."""
    w_in, num_classes = w.shape
    assert b.shape == (num_classes,)
    n_pad = _round_up(num_classes, 128)
    if n_pad != num_classes:
        w = jnp.pad(w, ((0, 0), (0, n_pad - num_classes)))
        b = jnp.pad(b, (0, n_pad - num_classes))
    w_p = w.astype(compute_dtype)                                      # (w_in, n_pad)
    bias_tile = jnp.broadcast_to(
        b.reshape(1, n_pad).astype(jnp.float32), (8, n_pad))           # (8, n_pad)
    return w_p, bias_tile, num_classes


def vit_head(x, w_p, bias_tile, num_classes, *, tile_b=1024, tile_n=2048):
    """Linear head: x (B, w_in) @ W (w_in, n_pad) + b, returns (B, num_classes).

    Weight is stored pre-transposed and pre-padded relative to nn.Linear, so the
    kernel computes y = x @ W + b (identical math to x @ W_linear.T + b).
    """
    B, w_in = x.shape
    w_in2, n_pad = w_p.shape
    assert w_in == w_in2 and bias_tile.shape == (8, n_pad)

    # Batch tile: multiple of 8 sublanes, clamped for small batches. No batch
    # padding -- cdiv grid + masked boundary stores handle the remainder rows.
    tile_b = min(tile_b, _round_up(B, 8))
    # Class tile: multiple of 128 lanes; single tile (fully resident W) when small.
    tile_n = min(_round_up(tile_n, 128), n_pad)

    grid = (pl.cdiv(B, tile_b), pl.cdiv(n_pad, tile_n))  # N is the inner axis
    n_tiles = grid[1]

    # W / bias are revisited every batch tile; if there is a single N tile their
    # index_maps are constant -> single-buffer them to halve their VMEM footprint.
    wb_buffers = 1 if n_tiles == 1 else None

    out_dtype = x.dtype
    cost = pl.CostEstimate(
        flops=2 * B * w_in * n_pad,
        transcendentals=0,
        bytes_accessed=(x.size * x.dtype.itemsize
                        + w_p.size * w_p.dtype.itemsize
                        + bias_tile.size * bias_tile.dtype.itemsize
                        + B * n_pad * jnp.dtype(out_dtype).itemsize),
    )

    out = pl.pallas_call(
        _vit_head_kernel,
        out_shape=jax.ShapeDtypeStruct((B, n_pad), out_dtype),
        grid_spec=pltpu.PrefetchScalarGridSpec(
            num_scalar_prefetch=0,
            grid=grid,
            in_specs=[
                # x tile stays resident across the inner N axis.
                pl.BlockSpec((tile_b, w_in), lambda i, j: (i, 0)),
                _maybe_buffered_spec((w_in, tile_n), lambda i, j: (0, j), wb_buffers),
                _maybe_buffered_spec((8, tile_n), lambda i, j: (0, j), wb_buffers),
            ],
            out_specs=pl.BlockSpec((tile_b, tile_n), lambda i, j: (i, j)),
        ),
        compiler_params=pltpu.CompilerParams(
            # Both axes independent (no reduction axis: K is kept whole).
            dimension_semantics=("parallel", "parallel"),
            vmem_limit_bytes=64 * 1024 * 1024,   # v5e's 16 MiB scoped default is too small
        ),
        cost_estimate=cost,
    )(x, w_p, bias_tile)

    # Only the class dim is padded; consumers that can mask/ignore pad lanes
    # (argmax/softmax) should take the padded logits directly to skip this slice.
    return out[:, :num_classes]


if __name__ == "__main__":
    # Small shapes consistent with the module: batch=8, w_in=32, num_classes=16.
    B, W_IN, NUM_CLASSES = 8, 32, 16

    key = jax.random.PRNGKey(0)
    kx, kw, kb = jax.random.split(key, 3)

    x = jax.random.normal(kx, (B, W_IN), dtype=jnp.float32)
    # nn.Linear(w_in, num_classes, bias=True) params, weight stored pre-transposed
    # as (w_in, num_classes).
    w = jax.random.normal(kw, (W_IN, NUM_CLASSES), dtype=jnp.float32) * 0.02
    b = jax.random.normal(kb, (NUM_CLASSES,), dtype=jnp.float32) * 0.01

    # One-time parameter prep (load time), then the per-call kernel.
    w_p, bias_tile, nc = prepare_vit_head_params(w, b, compute_dtype=jnp.bfloat16)
    out = vit_head(x, w_p, bias_tile, nc)
    out = jax.block_until_ready(out)

    # Reference check against plain JAX linear (f32); tolerance sized for the
    # bf16 matmul with f32 accumulation used on the MXU.
    ref = x @ w + b[None, :]
    assert out.shape == (B, NUM_CLASSES)
    assert jnp.allclose(out, ref, atol=1e-2, rtol=1e-2)

    print("KERNEL_OK")
</pallas_src>

<mosaic_0001>
module attributes {stable_mosaic.version = 11 : i64} {
  func.func @_vit_head_kernel(%arg0: i32, %arg1: i32, %arg2: memref<8x32xf32, #tpu.memory_space<vmem>>, %arg3: memref<32x128xbf16, #tpu.memory_space<vmem>>, %arg4: memref<8x128xf32, #tpu.memory_space<vmem>>, %arg5: memref<8x128xf32, #tpu.memory_space<vmem>>) attributes {dimension_semantics = [#tpu.dimension_semantics<parallel>, #tpu.dimension_semantics<parallel>], iteration_bounds = array<i64: 1, 1>, scalar_prefetch = 0 : i64, scratch_operands = 0 : i64, tpu.core_type = #tpu.core_type<tc>, window_params = [{transform_indices = @transform_0, window_bounds = array<i64: 8, 32>}, {pipeline_mode = #tpu.pipeline_mode<synchronous>, transform_indices = @transform_1, window_bounds = array<i64: 32, 128>}, {pipeline_mode = #tpu.pipeline_mode<synchronous>, transform_indices = @transform_2, window_bounds = array<i64: 8, 128>}, {transform_indices = @transform_3, window_bounds = array<i64: 8, 128>}]} {
    %c0 = arith.constant 0 : index
    %c0_0 = arith.constant 0 : index
    %0 = vector.load %arg2[%c0, %c0_0] : memref<8x32xf32, #tpu.memory_space<vmem>>, vector<8x32xf32>
    %1 = arith.truncf %0 : vector<8x32xf32> to vector<8x32xbf16>
    %c0_1 = arith.constant 0 : index
    %c0_2 = arith.constant 0 : index
    %2 = vector.load %arg3[%c0_1, %c0_2] : memref<32x128xbf16, #tpu.memory_space<vmem>>, vector<32x128xbf16>
    %cst = arith.constant dense<0.000000e+00> : vector<8x128xf32>
    %3 = tpu.matmul %1, %2, %cst {dimension_numbers = #tpu.dot_dimension_numbers<[1], [0], [0], [1], [0, 0, 1, 1], [], []>} : vector<8x32xbf16>, vector<32x128xbf16>, vector<8x128xf32> -> vector<8x128xf32>
    %c0_3 = arith.constant 0 : index
    %c0_4 = arith.constant 0 : index
    %4 = vector.load %arg4[%c0_3, %c0_4] : memref<8x128xf32, #tpu.memory_space<vmem>>, vector<1x128xf32>
    %5 = vector.broadcast %4 : vector<1x128xf32> to vector<8x128xf32>
    %6 = arith.addf %3, %5 : vector<8x128xf32>
    %c0_5 = arith.constant 0 : index
    %c0_6 = arith.constant 0 : index
    %7 = vector.load %arg5[%c0_5, %c0_6] : memref<8x128xf32, #tpu.memory_space<vmem>>, vector<8x128xf32>
    tpu.vector_store %arg5[%c0_5, %c0_6], %6 {strides = array<i32>} : memref<8x128xf32, #tpu.memory_space<vmem>>, vector<8x128xf32>,
    return
  }
  func.func @transform_0(%arg0: i32, %arg1: i32) -> (i32, i32) {
    %c0_i32 = arith.constant 0 : i32
    %c0_i32_0 = arith.constant 0 : i32
    return %arg0, %c0_i32 : i32, i32
  }
  func.func @transform_1(%arg0: i32, %arg1: i32) -> (i32, i32) {
    %c0_i32 = arith.constant 0 : i32
    %c0_i32_0 = arith.constant 0 : i32
    return %c0_i32, %arg1 : i32, i32
  }
  func.func @transform_2(%arg0: i32, %arg1: i32) -> (i32, i32) {
    %c0_i32 = arith.constant 0 : i32
    %c0_i32_0 = arith.constant 0 : i32
    return %c0_i32, %arg1 : i32, i32
  }
  func.func @transform_3(%arg0: i32, %arg1: i32) -> (i32, i32) {
    %c0_i32 = arith.constant 0 : i32
    return %arg0, %arg1 : i32, i32
  }
}

</mosaic_0001>

<bundles_post_ra>
// kernel: tpu_custom_call.1
= control target key start
LH: loop header
LB: loop body
LE: loop exit
PB: predicated region body
PF: predicated region fallthrough
CT: control target
= control target key end

     0   :  { %8 = vsyncpa [#allocation3], 0  ;;  %s332_s0 = inlined_call_operand.hbm [shape: f32[8,32], index: 0, kind: input, shape index: {}]   ;;  %s333_s1 = inlined_call_operand.hbm [shape: bf16[32,128], index: 1, kind: input, shape index: {}]   ;;  %s334_s2 = inlined_call_operand.hbm [shape: f32[8,128], index: 2, kind: input, shape index: {}]   ;;  %s335_s3 = inlined_call_operand.hbm [shape: f32[8,128], index: 3, kind: output, shape index: {}]  }
   0x1   :  { %9 = vsyncpa [#allocation6], 0 }
   0x2   :  { %10 = vsyncpa [#allocation4], 0  ;;  %s256_s12 = smov [#allocation5]   ;;  %s162_s16 = scalar_lea.hbm %s333_s1, 256 }
   0x3   :  { %s26_s13 = sshll.u32 %s256_s12, 4  ;;  %p163_p0 = scmp.ne.s32.totalorder %s333_s1, %s162_s16  ;;  %s27_s13 = int_to_ptr.vmem [resolvable:$true] %s26_s13 }
   0x4   :  { %p166_p1 = scmp.lt.u32.totalorder %s162_s16, %s333_s1 }
   0x6   :  { %p168_p2 = pnand %p166_p1, %p163_p0 }
   0x8   :  { %171 = shalt.err (!%p168_p2)
}
   0x9   :  { %s172_s21 = scalar_lea.vmem %s27_s13, 256  ;;  %p177_p4 = scmp.lt.s32.totalorder %s27_s13, %s27_s13 }
   0xa   :  { %p173_p3 = scmp.ne.s32.totalorder %s27_s13, %s172_s21  ;;  %p178_p5 = scmp.lt.s32.totalorder %s172_s21, %s172_s21 }
   0xc   :  { %p179_p6 = por %p178_p5, %p177_p4 }
   0xe   :  { %p180_p7 = pnand %p179_p6, %p173_p3 }
  0x10   :  { %183 = shalt.err (!%p180_p7)
}
  0x11   :  { %s257_s22 = smov 64   ;;  %s258_s23 = smov 4  }
  0x12   :  { %32 = dma.hbm_to_vmem [thread:$0]  %s333_s1, 256, %s27_s13, [#allocation6], %s257_s22, %s257_s22, %s258_s23  }
  0x13   :  { %s259_s26 = smov [#allocation2]   ;;  %s260_s28 = smov [#allocation7]  }
  0x14   :  { %s17_s27 = sshll.u32 %s259_s26, 4  ;;  %s39_s29 = sshll.u32 %s260_s28, 4  ;;  %s18_s27 = int_to_ptr.vmem [resolvable:$true] %s17_s27  ;;  %s40_s29 = int_to_ptr.vmem [resolvable:$true] %s39_s29 }
  0x15   :  { %s184_s5 = scalar_lea.hbm %s332_s0, 128 }
  0x16   :  { %p185_p8 = scmp.ne.s32.totalorder %s332_s0, %s184_s5  ;;  %p188_p9 = scmp.lt.u32.totalorder %s184_s5, %s332_s0 }
  0x18   :  { %p190_p10 = pnand %p188_p9, %p185_p8 }
  0x1a   :  { %193 = shalt.err (!%p190_p10)
}
  0x1b   :  { %s194_s1 = scalar_lea.vmem %s18_s27, 128  ;;  %p199_p12 = scmp.lt.s32.totalorder %s18_s27, %s18_s27 }
  0x1c   :  { %p195_p11 = scmp.ne.s32.totalorder %s18_s27, %s194_s1  ;;  %p200_p13 = scmp.lt.s32.totalorder %s194_s1, %s194_s1 }
  0x1e   :  { %p201_p0 = por %p200_p13, %p199_p12 }
  0x20   :  { %p202_p1 = pnand %p201_p0, %p195_p11 }
  0x22   :  { %205 = shalt.err (!%p202_p1)
}
  0x23   :  { %20 = dma.hbm_to_vmem [thread:$0]  %s332_s0, 128, %s18_s27, [#allocation3]  }
  0x24   :  { %s206_s14 = scalar_lea.hbm %s334_s2, 128 }
  0x25   :  { %p207_p2 = scmp.ne.s32.totalorder %s334_s2, %s206_s14  ;;  %p210_p3 = scmp.lt.u32.totalorder %s206_s14, %s334_s2 }
  0x27   :  { %p212_p4 = pnand %p210_p3, %p207_p2 }
  0x29   :  { %215 = shalt.err (!%p212_p4)
}
  0x2a   :  { %s216_s19 = scalar_lea.vmem %s40_s29, 128  ;;  %p221_p6 = scmp.lt.s32.totalorder %s40_s29, %s40_s29 }
  0x2b   :  { %p217_p5 = scmp.ne.s32.totalorder %s40_s29, %s216_s19  ;;  %p222_p7 = scmp.lt.s32.totalorder %s216_s19, %s216_s19 }
  0x2d   :  { %p223_p8 = por %p222_p7, %p221_p6 }
  0x2f   :  { %p224_p9 = pnand %p223_p8, %p217_p5 }
  0x31   :  { %227 = shalt.err (!%p224_p9)
}
  0x32   :  { %42 = dma.hbm_to_vmem [thread:$0]  %s334_s2, 128, %s40_s29, [#allocation6]  }
  0x33   :  { %250 = dma.done.wait [#allocation3], 128  }
  0x34   :  { %251 = vsyncadd [#allocation3], 4294967168 }
  0x35   :  { %252 = dma.done.wait [#allocation6], 384  }
  0x36   :  { %253 = vsyncadd [#allocation6], 4294966912  ;;  %v261_v0 = vmov 0.0   ;;  %vm262_vm0 = vmmov 0   ;;  %v160_v1 = vld [vmem:[#allocation5] sm:$0xff]   ;;  %v161_v2 = vld [vmem:[#allocation5 + $0x8] sm:$0xff]  }
  0x37   :  { %144 = vmatprep.subr.bf16.mxu0 %v261_v0  ;;  %148 = vmatprep.mubr.msk.bf16.mxu0 %vm262_vm0, %v261_v0  ;;  %v53_v3 = vld [vmem:[#allocation2] sm:$0xff]  ;;  %vm76_vm1 = vcmask 261120   ;;  %v137_v5 = vld [vmem:[#allocation7] ss:$0 sm:$0xff]  ;;  %s263_s21 = smov [#allocation8]  }
  0x38   :  { %145 = vmatpush3.bf16.msra.mxu0 %v160_v1  ;;  %v54_v4 = vpack.c.bf16 %v53_v3, %v53_v3  ;;  %s127_s2 = sshll.u32 %s263_s21, 4  ;;  %s128_s2 = int_to_ptr.vmem [resolvable:$true] %s127_s2 }
  0x39   :  { %146 = vmatprep.subr.bf16.mxu0 %v261_v0  ;;  %s228_s22 = scalar_lea.vmem %s128_s2, 128  ;;  %p233_p11 = scmp.lt.s32.totalorder %s128_s2, %s128_s2 }
  0x3a   :  { %p229_p10 = scmp.ne.s32.totalorder %s128_s2, %s228_s22  ;;  %p234_p12 = scmp.lt.s32.totalorder %s228_s22, %s228_s22 }
  0x3c   :  { %147 = vmatpush3.bf16.msra.mxu0 %v161_v2  ;;  %p235_p13 = por %p234_p12, %p233_p11 }
  0x3e   :  { %p236_p0 = pnand %p235_p13, %p229_p10 }
  0x3f   :  { %149 = vmatmul.mubr.msk.bf16.vlgmr.msra.gmra.mrb[0].mxu0 %vm76_vm1, %v54_v4 }
 0x112   :  { %v114_v6 = vpop.f32.mrb[0].mxu0 }
 0x113   :  { %v115_v7 = vadd.f32 %v137_v5, %v114_v6  ;;  %v150_v8 = vpop.f32.mrb[1].mxu0 }
 0x114   :  { %v117_v9 = vpop.f32.mrb[2].mxu0 }
 0x115   :  { %120 = vst [vmem:[#allocation8] sm:$0xff] %v115_v7  ;;  %v151_v10 = vpop.f32.mrb[3].mxu0 }
 0x116   :  { %239 = shalt.err (!%p236_p0)
}
 0x117   :  { %s240_s25 = scalar_lea.hbm %s335_s3, 128 }
 0x118   :  { %p241_p1 = scmp.ne.s32.totalorder %s335_s3, %s240_s25  ;;  %p244_p2 = scmp.lt.u32.totalorder %s240_s25, %s335_s3 }
 0x11a   :  { %p246_p3 = pnand %p244_p2, %p241_p1 }
 0x11c   :  { %249 = shalt.err (!%p246_p3)
}
 0x11d   :  { %130 = dma.vmem_to_hbm [thread:$0]  %s128_s2, 128, %s335_s3, [#allocation4]  }
 0x11e   :  { %254 = dma.done.wait [#allocation4], 128  }
 0x11f   :  { %255 = vsyncadd [#allocation4], 4294967168 }
 0x120   :  { %134 = vsyncpa [#allocation3], 1 }
 0x121   :  { %135 = vsyncpa [#allocation6], 1 }
 0x122   :  { %136 = vsyncpa [#allocation4], 1 }

</bundles_post_ra>
